<compile_context>
chip_gen: v5e
topology: v5e:2x2
jax: 0.10.0
libtpu: 0.0.40
codegen_flags: <defaults>
</compile_context>

<pallas_src>
import jax
import jax.numpy as jnp
from jax import lax
from jax.experimental import pallas as pl
from jax.experimental.pallas import tpu as pltpu

MAX_LEN = 362    # hardcoded in the PyTorch forward: padding_mask(..., max_len=362)
MASK_PAD = 384   # 3 * 128 -> lane-dense, unmasked vector stores; sliced to 362 outside
LEN_PAD = 128    # lane-padded int32 lengths block; column 0 is read back
_B_ALIGN = 32    # int8 mask output packs 4/sublane -> keep multi-step batch tiles 32-aligned


def _length_mask_kernel(x_ref, mask_ref, len_ref):
    """x_ref:    (bt, T, F) float32, native layout (F on lanes, T on sublanes).
    mask_ref: (bt, MASK_PAD) int8;  mask[b, m] = (m < length[b]).
    len_ref:  (bt, LEN_PAD) int32;  every lane holds length[b] (column 0 used)."""
    x = x_ref[...]                                        # (bt, T, F)
    bt, t, f = x.shape

    # Timepoint is "non-zero" if any feature != 0 (lane-axis reduce over F).
    nz = (x != 0.0).astype(jnp.int32)                     # (bt, T, F)
    nonzero_t = jnp.max(nz, axis=2) > 0                   # (bt, T)

    # length = index of first all-zero timepoint; T if there is none.
    t_iota = lax.broadcasted_iota(jnp.int32, (bt, t), 1)
    candidates = jnp.where(nonzero_t, jnp.int32(t), t_iota)
    lengths = jnp.min(candidates, axis=1, keepdims=True)  # (bt, 1) int32

    # padding_mask(lengths, max_len): lane-dense 384-wide int8 mask.
    m_iota = lax.broadcasted_iota(jnp.int32, (bt, MASK_PAD), 1)
    mask_ref[...] = (m_iota < lengths).astype(jnp.int8)
    len_ref[...] = jnp.broadcast_to(lengths, (bt, LEN_PAD))


def _pick_b_tile(B, T, F, vmem_block_budget_bytes=16 << 20):
    """Largest 32-aligned batch tile whose double-buffered input block (F lane-
    padded to 128 in VMEM, T padded to 8 sublanes) plus double-buffered outputs
    fits the budget; capped so the batch grid has >= 2 steps when B allows
    (keeps both v7x TensorCores busy). Collapses to a single exact block for
    small B (full-extent dims dodge all alignment constraints)."""
    lanes_f = ((max(F, 1) + 127) // 128) * 128
    sub_t = ((max(T, 1) + 7) // 8) * 8
    per_row = 2 * (sub_t * lanes_f * 4) + 2 * (MASK_PAD * 1 + LEN_PAD * 4)
    bt = max(_B_ALIGN,
             (vmem_block_budget_bytes // per_row) // _B_ALIGN * _B_ALIGN)
    # >= 2 grid steps when batch allows (v7x dual-TC sharding).
    half_aligned = (((B + 1) // 2) + _B_ALIGN - 1) // _B_ALIGN * _B_ALIGN
    bt = min(bt, max(_B_ALIGN, half_aligned))
    if bt >= B:
        bt = B   # single block: block dims equal full array dims
    return int(bt)


def model_wrapper_forward(x):
    """JAX/Pallas equivalent of ModelWrapper.forward's own computation.

    Args:
      x: float32 array of shape (B, T, F), native layout (no transpose needed).
    Returns:
      padding_masks: bool array (B, MAX_LEN)
      lengths:       int32 array (B,)
    """
    B, T, F = x.shape
    b_tile = _pick_b_tile(B, T, F)
    grid = (pl.cdiv(B, b_tile),)   # ragged last block allowed; out_shape is exactly B rows

    mask_i8, len_lanes = pl.pallas_call(
        _length_mask_kernel,
        out_shape=(jax.ShapeDtypeStruct((B, MASK_PAD), jnp.int8),
                   jax.ShapeDtypeStruct((B, LEN_PAD), jnp.int32)),
        grid=grid,
        in_specs=[pl.BlockSpec((b_tile, T, F), lambda b: (b, 0, 0))],
        out_specs=(pl.BlockSpec((b_tile, MASK_PAD), lambda b: (b, 0)),
                   pl.BlockSpec((b_tile, LEN_PAD), lambda b: (b, 0))),
        compiler_params=pltpu.CompilerParams(
            dimension_semantics=("parallel",),
            vmem_limit_bytes=32 << 20),
        cost_estimate=pl.CostEstimate(
            flops=0,
            transcendentals=0,
            bytes_accessed=B * T * F * 4 + B * (MASK_PAD + LEN_PAD * 4)),
    )(x)

    padding_masks = mask_i8[:, :MAX_LEN].astype(jnp.bool_)
    lengths = len_lanes[:, 0]
    return padding_masks, lengths


if __name__ == "__main__":
    key = jax.random.PRNGKey(0)
    B, T, F = 2, 16, 8

    x = jax.random.normal(key, (B, T, F), dtype=jnp.float32)
    # Emulate zero-padded sequences: sample 0 has 10 valid timepoints,
    # sample 1 has all 16 valid (no all-zero timepoint).
    valid_len = jnp.array([10, T], dtype=jnp.int32)
    t_idx = jnp.arange(T)[None, :, None]                     # (1, T, 1)
    x = jnp.where(t_idx < valid_len[:, None, None], x, 0.0)  # zero out the tail

    padding_masks, lengths = model_wrapper_forward(x)
    jax.block_until_ready((padding_masks, lengths))

    # Reference check (plain JAX): first all-zero timepoint -> break semantics.
    ref_nonzero = jnp.any(x != 0, axis=-1)
    ref_len = jnp.min(
        jnp.where(ref_nonzero, T, jnp.arange(T)[None, :]), axis=1
    ).astype(jnp.int32)
    ref_mask = jnp.arange(MAX_LEN)[None, :] < ref_len[:, None]

    assert jnp.array_equal(lengths, ref_len), (lengths, ref_len)
    assert jnp.array_equal(padding_masks, ref_mask)
    assert padding_masks.shape == (B, MAX_LEN)

    print("KERNEL_OK")
</pallas_src>

<mosaic_0001>
module attributes {stable_mosaic.version = 11 : i64} {
  func.func @_length_mask_kernel(%arg0: i32, %arg1: memref<2x16x8xf32, #tpu.memory_space<vmem>>, %arg2: memref<2x384xi8, #tpu.memory_space<vmem>>, %arg3: memref<2x128xi32, #tpu.memory_space<vmem>>) attributes {dimension_semantics = [#tpu.dimension_semantics<parallel>], iteration_bounds = array<i64: 1>, scalar_prefetch = 0 : i64, scratch_operands = 0 : i64, tpu.core_type = #tpu.core_type<tc>, window_params = [{transform_indices = @transform_0, window_bounds = array<i64: 2, 16, 8>}, {transform_indices = @transform_1, window_bounds = array<i64: 2, 384>}, {transform_indices = @transform_2, window_bounds = array<i64: 2, 128>}]} {
    %c0 = arith.constant 0 : index
    %c0_0 = arith.constant 0 : index
    %c0_1 = arith.constant 0 : index
    %0 = vector.load %arg1[%c0, %c0_0, %c0_1] : memref<2x16x8xf32, #tpu.memory_space<vmem>>, vector<2x16x8xf32>
    %cst = arith.constant 0.000000e+00 : f32
    %1 = vector.broadcast %cst : f32 to vector<2x16x8xf32>
    %2 = arith.cmpf one, %0, %1 : vector<2x16x8xf32>
    %3 = arith.extui %2 : vector<2x16x8xi1> to vector<2x16x8xi32>
    %cst_2 = arith.constant dense<-2147483648> : vector<2x16xi32>
    %4 = vector.multi_reduction <maxsi>, %3, %cst_2 [2] : vector<2x16x8xi32> to vector<2x16xi32>
    %c0_i32 = arith.constant 0 : i32
    %5 = vector.broadcast %c0_i32 : i32 to vector<2x16xi32>
    %6 = arith.cmpi sgt, %4, %5 : vector<2x16xi32>
    %7 = tpu.iota {dimensions = array<i32: 1>} : vector<2x16xi32>
    %c16_i32 = arith.constant 16 : i32
    %8 = vector.broadcast %c16_i32 : i32 to vector<2x16xi32>
    %9 = arith.select %6, %8, %7 : vector<2x16xi1>, vector<2x16xi32>
    %cst_3 = arith.constant dense<2147483647> : vector<2xi32>
    %10 = vector.multi_reduction <minsi>, %9, %cst_3 [1] : vector<2x16xi32> to vector<2xi32>
    %11 = vector.shape_cast %10 : vector<2xi32> to vector<2x1xi32>
    %12 = tpu.iota {dimensions = array<i32: 1>} : vector<2x384xi32>
    %13 = vector.broadcast %11 : vector<2x1xi32> to vector<2x384xi32>
    %14 = arith.cmpi slt, %12, %13 : vector<2x384xi32>
    %15 = arith.extui %14 : vector<2x384xi1> to vector<2x384xi8>
    %c0_4 = arith.constant 0 : index
    %c0_5 = arith.constant 0 : index
    %16 = vector.load %arg2[%c0_4, %c0_5] : memref<2x384xi8, #tpu.memory_space<vmem>>, vector<2x384xi8>
    tpu.vector_store %arg2[%c0_4, %c0_5], %15 {strides = array<i32>} : memref<2x384xi8, #tpu.memory_space<vmem>>, vector<2x384xi8>,
    %17 = vector.shape_cast %11 : vector<2x1xi32> to vector<2x1xi32>
    %18 = vector.broadcast %17 : vector<2x1xi32> to vector<2x128xi32>
    %c0_6 = arith.constant 0 : index
    %c0_7 = arith.constant 0 : index
    %19 = vector.load %arg3[%c0_6, %c0_7] : memref<2x128xi32, #tpu.memory_space<vmem>>, vector<2x128xi32>
    tpu.vector_store %arg3[%c0_6, %c0_7], %18 {strides = array<i32>} : memref<2x128xi32, #tpu.memory_space<vmem>>, vector<2x128xi32>,
    return
  }
  func.func @transform_0(%arg0: i32) -> (i32, i32, i32) {
    %c0_i32 = arith.constant 0 : i32
    %c0_i32_0 = arith.constant 0 : i32
    %c0_i32_1 = arith.constant 0 : i32
    return %arg0, %c0_i32, %c0_i32_0 : i32, i32, i32
  }
  func.func @transform_1(%arg0: i32) -> (i32, i32) {
    %c0_i32 = arith.constant 0 : i32
    %c0_i32_0 = arith.constant 0 : i32
    return %arg0, %c0_i32 : i32, i32
  }
  func.func @transform_2(%arg0: i32) -> (i32, i32) {
    %c0_i32 = arith.constant 0 : i32
    %c0_i32_0 = arith.constant 0 : i32
    return %arg0, %c0_i32 : i32, i32
  }
}

</mosaic_0001>

<bundles_post_ra>
// kernel: tpu_custom_call.1
= control target key start
LH: loop header
LB: loop body
LE: loop exit
PB: predicated region body
PF: predicated region fallthrough
CT: control target
= control target key end

     0   :  { %8 = vsyncpa [#allocation3], 0  ;;  %vm26_vm0 = vcmask 64512   ;;  %v91_v4 = vlaneseq  ;;  %v287_v5 = vmov 0   ;;  %s366_s0 = inlined_call_operand.vmem [shape: f32[2,16,8], index: 0, kind: input, shape index: {}]   ;;  %s367_s1 = inlined_call_operand.hbm [shape: s8[2,384], index: 1, kind: output, shape index: {0}]   ;;  %s368_s2 = inlined_call_operand.hbm [shape: s32[2,128], index: 2, kind: output, shape index: {1}]  }
   0x1   :  { %v16_v0 = vld [vmem:[%s366_s0 + $0x10] sm:$0xff]  ;;  %v14_v1 = vld [vmem:[%s366_s0] sm:$0xff]  ;;  %v17_v2 = vld [vmem:[%s366_s0 + $0x18] sm:$0xff]  ;;  %232 = vset.pattern.permute.xlu1 %v287_v5 }
   0x2   :  { %vm20_vm1 = vcmp.ne.f32.partialorder %v16_v0, 0.0  ;;  %vm18_vm2 = vcmp.ne.f32.partialorder %v14_v1, 0.0  ;;  %vm21_vm3 = vcmp.ne.f32.partialorder %v17_v2, 0.0  ;;  %v15_v3 = vld [vmem:[%s366_s0 + $0x8] sm:$0xff] }
   0x3   :  { %9 = vsyncpa [#allocation5], 0  ;;  %v24_v6 = vsel %vm20_vm1, 1, %v287_v5  ;;  %v22_v7 = vsel %vm18_vm2, 1, %v287_v5  ;;  %v25_v8 = vsel %vm21_vm3, 1, %v287_v5  ;;  %vm19_vm4 = vcmp.ne.f32.partialorder %v15_v3, 0.0 }
   0x4   :  { %v57_v9 = vsel %vm26_vm0, %v24_v6, 2147483648  ;;  %v27_v10 = vsel %vm26_vm0, %v22_v7, 2147483648  ;;  %v23_v11 = vsel %vm19_vm4, 1, %v287_v5  ;;  %v72_v14 = vsel %vm26_vm0, %v25_v8, 2147483648  ;;  %s288_s0 = smov [#allocation4]   ;;  %s213_s20 = sshll.u32 %s368_s2, 4  ;;  %s214_s20 = int_to_ptr.hbm [resolvable:$true] %s213_s20 }
   0x5   :  { %v59_v12 = vshra.s32 %v57_v9, 16  ;;  %v29_v13 = vshra.s32 %v27_v10, 16  ;;  %v42_v15 = vsel %vm26_vm0, %v23_v11, 2147483648  ;;  %v94_v16 = vshrl.u32 %v91_v4, 7  ;;  %s211_s17 = sshll.u32 %s288_s0, 4  ;;  %s289_s2 = smov [#allocation2]   ;;  %s212_s17 = int_to_ptr.vmem [resolvable:$true] %s211_s17 }
   0x6   :  { %v74_v19 = vshra.s32 %v72_v14, 16  ;;  %v44_v20 = vshra.s32 %v42_v15, 16  ;;  %v326_v21 = vand.u32 127, %v91_v4  ;;  %v58_v25 = vand.u32 65535, %v57_v9  ;;  %s200_s21 = sshll.u32 %s289_s2, 4  ;;  %s202_s24 = sshll.u32 %s367_s1, 4  ;;  %s201_s21 = int_to_ptr.vmem [resolvable:$true] %s200_s21  ;;  %s203_s24 = int_to_ptr.hbm [resolvable:$true] %s202_s24 }
   0x7   :  { %v61_v17 = vcvt.s32.f32 %v59_v12  ;;  %v31_v18 = vcvt.s32.f32 %v29_v13  ;;  %230 = vset.pattern.permute.xlu2 %v94_v16  ;;  %v101_v24 = vadd.s32 8, %v94_v16  ;;  %v28_v26 = vand.u32 65535, %v27_v10 }
   0x8   :  { %v76_v22 = vcvt.s32.f32 %v74_v19  ;;  %v46_v23 = vcvt.s32.f32 %v44_v20  ;;  %v60_v27 = vcvt.s32.f32 %v58_v25  ;;  %v73_v33 = vand.u32 65535, %v72_v14 }
   0x9   :  { %62 = vmax.xlane.f32.xlu1 %v61_v17  ;;  %32 = vmax.xlane.f32.xlu0 %v31_v18  ;;  %v30_v28 = vcvt.s32.f32 %v28_v26  ;;  %v43_v34 = vand.u32 65535, %v42_v15  ;;  %v122_v6 = vadd.s32 4294967288, %v326_v21  ;;  %vm124_vm13 = vcmask 130112  }
   0xa   :  { %231 = vset.pattern.permute.xlu0 %v101_v24  ;;  %v75_v35 = vcvt.s32.f32 %v73_v33  ;;  %vm129_vm14 = vcmask 1041409   ;;  %vm131_vm15 = vcmask 123904   ;;  %v147_v25 = vadd.s32 128, %v326_v21 }
   0xb   :  { %v45_v36 = vcvt.s32.f32 %v43_v34  ;;  %v148_v26 = vadd.s32 256, %v326_v21  ;;  %vm172_vm1 = vcmask 1040384   ;;  %vm181_vm2 = vsmask.f32 256 }
   0xc   :  { %vm184_vm3 = vsmask.f32 1280  ;;  %vm342_vm4 = vmand %vm172_vm1, %vm181_vm2 }
   0xf   :  { %97 = vperm.xlu2 %230, %v326_v21  }
  0x11   :  { %77 = vmax.xlane.f32.xlu1 %v76_v22  ;;  %47 = vmax.xlane.f32.xlu0 %v46_v23 }
  0x17   :  { %233 = vset.pattern.permute.xlu2 %v287_v5 }
  0x69   :  { %v98_v41 = vpop.permute.xlu2 %97 }
  0x7c   :  { %v63_v29 = vpop.xlane.xlu1 %62  ;;  %v33_v30 = vpop.xlane.xlu0 %32 }
  0x7d   :  { %vm64_vm5 = vcmp.eq.f32.partialorder %v61_v17, %v63_v29  ;;  %vm34_vm6 = vcmp.eq.f32.partialorder %v31_v18, %v33_v30  ;;  %v39_v42 = vcvt.f32.s32 %v33_v30  ;;  %v69_v57 = vcvt.f32.s32 %v63_v29 }
  0x7e   :  { %v65_v31 = vsel %vm64_vm5, %v60_v27, -inf  ;;  %v35_v32 = vsel %vm34_vm6, %v30_v28, -inf }
  0x7f   :  { %66 = vmax.xlane.f32.xlu0 %v65_v31  ;;  %36 = vmax.xlane.f32.xlu2 %v35_v32  ;;  %v40_v44 = vshll.u32 %v39_v42, 16  ;;  %v70_v61 = vshll.u32 %v69_v57, 16 }
  0x84   :  { %v78_v37 = vpop.xlane.xlu1 %77  ;;  %v48_v38 = vpop.xlane.xlu0 %47 }
  0x85   :  { %vm79_vm7 = vcmp.eq.f32.partialorder %v76_v22, %v78_v37  ;;  %vm49_vm8 = vcmp.eq.f32.partialorder %v46_v23, %v48_v38  ;;  %v84_v50 = vcvt.f32.s32 %v78_v37  ;;  %v54_v51 = vcvt.f32.s32 %v48_v38 }
  0x86   :  { %v80_v39 = vsel %vm79_vm7, %v75_v35, -inf  ;;  %v50_v40 = vsel %vm49_vm8, %v45_v36, -inf  ;;  %vm348_vm8 = vmand %vm129_vm14, %vm184_vm3 }
  0x87   :  { %81 = vmax.xlane.f32.xlu1 %v80_v39  ;;  %51 = vmax.xlane.f32.xlu2 %v50_v40  ;;  %v85_v55 = vshll.u32 %v84_v50, 16  ;;  %v55_v56 = vshll.u32 %v54_v51, 16 }
  0x93   :  { %103 = vperm.xlu0 %231, %v326_v21  }
  0x9b   :  { %234 = vset.pattern.permute.xlu0 %v287_v5 }
  0xf2   :  { %v37_v43 = vpop.xlane.xlu2 %36  ;;  %v67_v52 = vpop.xlane.xlu0 %66 }
  0xf3   :  { %v38_v45 = vcvt.f32.s32 %v37_v43  ;;  %v68_v60 = vcvt.f32.s32 %v67_v52  ;;  %v191_v43 = vld [vmem:[#allocation2] sm:$0x7] }
  0xf5   :  { %v41_v46 = vadd.s32 %v40_v44, %v38_v45  ;;  %v71_v1 = vadd.s32 %v70_v61, %v68_v60 }
  0xf7   :  { %vm87_vm9 = vcmp.gt.s32.totalorder %v41_v46, 0  ;;  %vm89_vm12 = vcmp.gt.s32.totalorder %v71_v1, 0 }
  0xf8   :  { %v105_v47 = vsel %vm87_vm9, 16, %v98_v41  ;;  %v107_v2 = vsel %vm89_vm12, 16, %v98_v41  ;;  %vm187_vm12 = vcmask 1042434  }
  0xf9   :  { %110 = vperm.xlu1 %232, %v105_v47  }
  0xfa   :  { %v82_v48 = vpop.xlane.xlu1 %81  ;;  %v52_v49 = vpop.xlane.xlu2 %51 }
  0xfb   :  { %v83_v53 = vcvt.f32.s32 %v82_v48  ;;  %v53_v54 = vcvt.f32.s32 %v52_v49 }
  0xfd   :  { %v86_v58 = vadd.s32 %v85_v55, %v83_v53  ;;  %v56_v59 = vadd.s32 %v55_v56, %v53_v54 }
  0xff   :  { %vm90_vm10 = vcmp.gt.s32.totalorder %v86_v58, 0  ;;  %vm88_vm11 = vcmp.gt.s32.totalorder %v56_v59, 0 }
 0x105   :  { %v104_v62 = vpop.permute.xlu0 %103 }
 0x106   :  { %v106_v63 = vsel %vm88_vm11, 16, %v104_v62  ;;  %v108_v0 = vsel %vm90_vm10, 16, %v104_v62 }
 0x107   :  { %119 = vperm.xlu1 %232, %v108_v0   ;;  %113 = vperm.xlu2 %233, %v106_v63  }
 0x10f   :  { %116 = vperm.xlu2 %233, %v107_v2  }
 0x161   :  { %v114_v3 = vpop.permute.xlu2 %113 }
 0x162   :  { %v123_v10 = vperm.slane %v114_v3, %v122_v6 }
 0x169   :  { %v117_v7 = vpop.permute.xlu2 %116 }
 0x16a   :  { %v126_v11 = vperm.slane %v117_v7, %v326_v21 }
 0x16b   :  { %v111_v4 = vpop.permute.xlu1 %110 }
 0x16c   :  { %v121_v8 = vperm.slane %v111_v4, %v326_v21 }
 0x16e   :  { %v125_v13 = vsel %vm124_vm13, %v123_v10, %v121_v8 }
 0x179   :  { %v120_v9 = vpop.permute.xlu1 %119 }
 0x17a   :  { %v127_v12 = vperm.slane %v120_v9, %v122_v6 }
 0x17c   :  { %v128_v14 = vsel %vm124_vm13, %v127_v12, %v126_v11  ;;  %vm188_vm13 = vsmask.f32 2304 }
 0x17d   :  { %v130_v15 = vsel %vm129_vm14, %v128_v14, %v125_v13  ;;  %vm186_vm14 = vmor %vm348_vm8, %vm342_vm4 }
 0x17e   :  { %v132_v16 = vsel %vm131_vm15, %v130_v15, 2147483647  ;;  %vm189_vm2 = vmand %vm187_vm12, %vm188_vm13 }
 0x17f   :  { %v134_v17 = vshra.s32 %v132_v16, 16  ;;  %v133_v19 = vand.u32 65535, %v132_v16  ;;  %vm190_vm4 = vmor %vm189_vm2, %vm186_vm14 }
 0x181   :  { %v136_v18 = vcvt.s32.f32 %v134_v17  ;;  %v135_v22 = vcvt.s32.f32 %v133_v19 }
 0x183   :  { %137 = vmin.xlane.f32.xlu2 %v136_v18 }
 0x1f6   :  { %v138_v20 = vpop.xlane.xlu2 %137 }
 0x1f7   :  { %vm139_vm0 = vcmp.eq.f32.partialorder %v136_v18, %v138_v20  ;;  %v144_v24 = vcvt.f32.s32 %v138_v20 }
 0x1f8   :  { %v140_v23 = vsel %vm139_vm0, %v135_v22, inf }
 0x1f9   :  { %141 = vmin.xlane.f32.xlu1 %v140_v23  ;;  %v145_v28 = vshll.u32 %v144_v24, 16 }
 0x26c   :  { %v142_v27 = vpop.xlane.xlu1 %141 }
 0x26d   :  { %v143_v29 = vcvt.f32.s32 %v142_v27 }
 0x26f   :  { %v146_v30 = vadd.s32 %v145_v28, %v143_v29 }
 0x271   :  { %vm149_vm5 = vcmp.lt.s32.totalorder %v326_v21, %v146_v30  ;;  %vm150_vm6 = vcmp.lt.s32.totalorder %v147_v25, %v146_v30  ;;  %vm151_vm7 = vcmp.lt.s32.totalorder %v148_v26, %v146_v30  ;;  %194 = vst [vmem:[#allocation4] sm:$0x3] %v146_v30 }
 0x272   :  { %vm152_vm9 = vmpackc.low %vm149_vm5, %vm149_vm5  ;;  %216 = dma.vmem_to_hbm [thread:$0]  %s212_s17, 32, %s214_s20, [#allocation5]   ;;  %vm176_vm5 = vcmask 1041408  }
 0x273   :  { %v153_v33 = vsel %vm152_vm9, 16711935, %v287_v5  ;;  %vm157_vm10 = vmpackc.low %vm150_vm6, %vm150_vm6 }
 0x274   :  { %v158_v34 = vsel %vm157_vm10, 16711935, %v287_v5  ;;  %vm162_vm11 = vmpackc.low %vm151_vm7, %vm151_vm7  ;;  %v155_v35 = vpack.c.b8 %v153_v33, %v153_v33 }
 0x275   :  { %v160_v21 = vpack.c.b8 %v158_v34, %v158_v34  ;;  %v163_v36 = vsel %vm162_vm11, 16711935, %v287_v5 }
 0x276   :  { %v165_v37 = vpack.c.b8 %v163_v36, %v163_v36  ;;  %vm156_vm0 = vnez %v155_v35 }
 0x277   :  { %vm161_vm15 = vnez %v160_v21  ;;  %v167_v41 = vsel %vm156_vm0, 16843009, %v287_v5 }
 0x278   :  { %vm166_vm3 = vnez %v165_v37  ;;  %v168_v38 = vsel %vm161_vm15, 16843009, %v287_v5 }
 0x279   :  { %v169_v39 = vsel %vm166_vm3, 16843009, %v287_v5  ;;  %v170_v40 = vrot.slane %v168_v38, 7 }
 0x27a   :  { %v171_v42 = vrot.slane %v169_v39, 6 }
 0x27b   :  { %v175_v44 = vsel %vm172_vm1, %v167_v41, %v170_v40 }
 0x27c   :  { %v178_v45 = vsel %vm176_vm5, %v175_v44, %v171_v42 }
 0x27d   :  { %v192_v46 = vsel %vm190_vm4, %v178_v45, %v191_v43 }
 0x27e   :  { %193 = vst [vmem:[#allocation2] sm:$0x7] %v192_v46 }
 0x27f   :  { %205 = dma.vmem_to_hbm [thread:$0]  %s201_s21, 48, %s203_s24, [#allocation3]  }
 0x280   :  { %283 = dma.done.wait [#allocation3], 48  }
 0x281   :  { %284 = vsyncadd [#allocation3], 4294967248 }
 0x282   :  { %285 = dma.done.wait [#allocation5], 32  }
 0x283   :  { %286 = vsyncadd [#allocation5], 4294967264 }
 0x284   :  { %225 = vsyncpa [#allocation3], 1 }
 0x285   :  { %226 = vsyncpa [#allocation5], 1 }

</bundles_post_ra>
